<compile_context>
chip_gen: v7x
topology: tpu7x:2x2x1
jax: 0.10.0
libtpu: 0.0.40
codegen_flags: <defaults>
</compile_context>

<pallas_src>
import functools

import jax
import jax.numpy as jnp
from jax.experimental import pallas as pl
from jax.experimental.pallas import tpu as pltpu


def mri_mlp_kernel(x_ref, w1_ref, b1_ref, w2_ref, b2_ref, o_ref, *, out_size,
                   negative_slope=0.01):
    # dense1: Dropout (identity in eval mode) -> Linear(in, hid_p)
    # TODO(synk): training-mode dropout would use pltpu.prng_seed +
    # pltpu.prng_random_bits to build a Bernoulli mask scaled by 1/(1-p).
    h = jnp.dot(x_ref[...], w1_ref[...], preferred_element_type=jnp.float32)
    h = h + b1_ref[...]

    # LeakyReLU (torch default negative_slope=0.01), f32 on the VPU.
    h = jnp.where(h >= 0.0, h, negative_slope * h)

    # dense2: Dropout (identity) -> Linear(hid_p, out_p); padded hidden rows
    # and padded output cols of w2/b2 are exactly zero.
    logits = jnp.dot(h, w2_ref[...], preferred_element_type=jnp.float32)
    logits = logits + b2_ref[...]
    logits = logits[:, :out_size]          # drop the padded logit lanes

    # Softmax over dim=1 (last dim), max-stabilized, exact normalization.
    m = jnp.max(logits, axis=-1, keepdims=True)
    e = jnp.exp(logits - m)
    denom = jnp.sum(e, axis=-1, keepdims=True)
    o_ref[...] = (e / denom).astype(o_ref.dtype)


def _round_up(x, m):
    return ((x + m - 1) // m) * m


def prepare_params(w1, b1, w2, b2):
    """Pad + cast parameters ONCE (hoisted out of the per-call wrapper).
    w1: [in, fil_num]; b1: [1, fil_num]; w2: [fil_num, out]; b2: [1, out]."""
    in_size, fil_num = w1.shape
    out_size = w2.shape[1]
    hid_p = _round_up(fil_num, 128)   # 100 -> 128 (lane-aligned MXU K dim)
    out_p = _round_up(out_size, 8)    # 3 -> 8 (tiny; sliced off in-kernel)
    w1p = jnp.zeros((in_size, hid_p), jnp.float32).at[:, :fil_num].set(
        w1.astype(jnp.float32))
    b1p = jnp.zeros((1, hid_p), jnp.float32).at[:, :fil_num].set(
        b1.astype(jnp.float32))
    w2p = jnp.zeros((hid_p, out_p), jnp.float32).at[:fil_num, :out_size].set(
        w2.astype(jnp.float32))
    b2p = jnp.zeros((1, out_p), jnp.float32).at[:, :out_size].set(
        b2.astype(jnp.float32))
    return {"w1": w1p, "b1": b1p, "w2": w2p, "b2": b2p, "out_size": out_size}


def mri_mlp(x, params, *, tile_b=2048):
    """x: [B, in_size] f32; params from prepare_params(). Returns [B, out_size] f32."""
    w1p, b1p, w2p, b2p = params["w1"], params["b1"], params["w2"], params["b2"]
    out_size = params["out_size"]
    B, in_size = x.shape
    hid_p = w1p.shape[1]
    out_p = w2p.shape[1]

    # Batch tile: multiple of 8 sublanes, large enough to amortize the ~0.35us
    # per-grid-step overhead, but capped so large B still yields >= 4 grid
    # steps (lets dimension_semantics=("parallel",) split work across the two
    # v7x TensorCores). The last partial tile is handled by boundary clipping.
    tb = max(8, min(int(tile_b), _round_up(B, 8)))
    if B >= 32:
        tb = max(8, min(tb, _round_up(pl.cdiv(B, 4), 8)))
    grid = (pl.cdiv(B, tb),)

    cost = pl.CostEstimate(
        flops=2 * B * (in_size * hid_p + hid_p * out_p),
        transcendentals=B * out_size,
        bytes_accessed=(x.size * 4
                        + (w1p.size + b1p.size + w2p.size + b2p.size) * 4
                        + B * out_size * 4),
    )

    # TODO(synk): get_intermediate_score early-return (dense1 output only) is
    # not exposed; it would be a separate, simpler kernel.
    return pl.pallas_call(
        functools.partial(mri_mlp_kernel, out_size=out_size),
        out_shape=jax.ShapeDtypeStruct((B, out_size), jnp.float32),
        grid=grid,
        in_specs=[
            # batch-tiled activations (read as f32 straight from HBM)
            pl.BlockSpec((tb, in_size), lambda i: (i, 0)),
            # weights/biases: constant block index -> VMEM-resident across steps
            pl.BlockSpec((in_size, hid_p), lambda i: (0, 0)),
            pl.BlockSpec((1, hid_p), lambda i: (0, 0)),
            pl.BlockSpec((hid_p, out_p), lambda i: (0, 0)),
            pl.BlockSpec((1, out_p), lambda i: (0, 0)),
        ],
        out_specs=pl.BlockSpec((tb, out_size), lambda i: (i, 0)),
        compiler_params=pltpu.CompilerParams(
            dimension_semantics=("parallel",),      # megacore sharding on v7x
            vmem_limit_bytes=32 * 1024 * 1024,      # explicit; far from binding
        ),
        cost_estimate=cost,
    )(x, w1p, b1p, w2p, b2p)


def init_params(key, in_size, fil_num=100, out_size=3):
    """Deterministic init mimicking nn.Linear default (uniform +/- 1/sqrt(fan_in)).
    Weights stored as [in, out] (transpose of torch's [out, in]) for x @ W."""
    k1, k2, k3, k4 = jax.random.split(key, 4)
    bound1 = 1.0 / jnp.sqrt(in_size)
    bound2 = 1.0 / jnp.sqrt(fil_num)
    w1 = jax.random.uniform(k1, (in_size, fil_num), jnp.float32, -bound1, bound1)
    b1 = jax.random.uniform(k2, (1, fil_num), jnp.float32, -bound1, bound1)
    w2 = jax.random.uniform(k3, (fil_num, out_size), jnp.float32, -bound2, bound2)
    b2 = jax.random.uniform(k4, (1, out_size), jnp.float32, -bound2, bound2)
    return w1, b1, w2, b2


def ref_forward(x, w1, b1, w2, b2):
    """Pure-JAX f32 reference (eval-mode: dropout = identity)."""
    h = jnp.dot(x, w1, precision=jax.lax.Precision.HIGHEST) + b1
    h = jnp.where(h >= 0.0, h, 0.01 * h)
    logits = jnp.dot(h, w2, precision=jax.lax.Precision.HIGHEST) + b2
    return jax.nn.softmax(logits, axis=1)


if __name__ == "__main__":
    key = jax.random.PRNGKey(0)
    kx, kp, kx2 = jax.random.split(key, 3)

    in_size, fil_num, out_size = 32, 100, 3
    w1, b1, w2, b2 = init_params(kp, in_size, fil_num, out_size)
    params = prepare_params(w1, b1, w2, b2)   # pad/cast once, not per forward

    # Small case (B=2): single clipped batch tile, grid=(1,).
    x = jax.random.normal(kx, (2, in_size), jnp.float32)
    out = jax.block_until_ready(mri_mlp(x, params))
    ref = ref_forward(x, w1, b1, w2, b2)
    assert out.shape == (2, out_size)
    assert jnp.allclose(out, ref, atol=5e-3), "mismatch vs f32 reference (B=2)"
    assert jnp.allclose(jnp.sum(out, axis=1), 1.0, atol=1e-4)

    # Multi-step grid case: exercises batch tiling / pipelining / parallel axis.
    x2 = jax.random.normal(kx2, (48, in_size), jnp.float32)
    out2 = jax.block_until_ready(mri_mlp(x2, params, tile_b=16))   # grid=(3,)
    ref2 = ref_forward(x2, w1, b1, w2, b2)
    assert out2.shape == (48, out_size)
    assert jnp.allclose(out2, ref2, atol=5e-3), "mismatch vs f32 reference (B=48)"
    assert jnp.allclose(jnp.sum(out2, axis=1), 1.0, atol=1e-4)

    print("KERNEL_OK")
</pallas_src>

<mosaic_0001>
module attributes {stable_mosaic.version = 11 : i64} {
  func.func @mri_mlp_kernel(%arg0: i32, %arg1: memref<8x32xf32, #tpu.memory_space<vmem>>, %arg2: memref<32x128xf32, #tpu.memory_space<vmem>>, %arg3: memref<1x128xf32, #tpu.memory_space<vmem>>, %arg4: memref<128x8xf32, #tpu.memory_space<vmem>>, %arg5: memref<1x8xf32, #tpu.memory_space<vmem>>, %arg6: memref<8x3xf32, #tpu.memory_space<vmem>>) attributes {dimension_semantics = [#tpu.dimension_semantics<parallel>], iteration_bounds = array<i64: 1>, scalar_prefetch = 0 : i64, scratch_operands = 0 : i64, tpu.core_type = #tpu.core_type<tc>, window_params = [{transform_indices = @transform_0, window_bounds = array<i64: 8, 32>}, {pipeline_mode = #tpu.pipeline_mode<synchronous>, transform_indices = @transform_1, window_bounds = array<i64: 32, 128>}, {pipeline_mode = #tpu.pipeline_mode<synchronous>, transform_indices = @transform_2, window_bounds = array<i64: 1, 128>}, {pipeline_mode = #tpu.pipeline_mode<synchronous>, transform_indices = @transform_3, window_bounds = array<i64: 128, 8>}, {pipeline_mode = #tpu.pipeline_mode<synchronous>, transform_indices = @transform_4, window_bounds = array<i64: 1, 8>}, {transform_indices = @transform_5, window_bounds = array<i64: 8, 3>}]} {
    %c0 = arith.constant 0 : index
    %c0_0 = arith.constant 0 : index
    %0 = vector.load %arg1[%c0, %c0_0] : memref<8x32xf32, #tpu.memory_space<vmem>>, vector<8x32xf32>
    %c0_1 = arith.constant 0 : index
    %c0_2 = arith.constant 0 : index
    %1 = vector.load %arg2[%c0_1, %c0_2] : memref<32x128xf32, #tpu.memory_space<vmem>>, vector<32x128xf32>
    %cst = arith.constant dense<0.000000e+00> : vector<8x128xf32>
    %2 = tpu.matmul %0, %1, %cst {dimension_numbers = #tpu.dot_dimension_numbers<[1], [0], [0], [1], [0, 0, 1, 1], [], []>} : vector<8x32xf32>, vector<32x128xf32>, vector<8x128xf32> -> vector<8x128xf32>
    %c0_3 = arith.constant 0 : index
    %c0_4 = arith.constant 0 : index
    %3 = vector.load %arg3[%c0_3, %c0_4] : memref<1x128xf32, #tpu.memory_space<vmem>>, vector<1x128xf32>
    %4 = vector.broadcast %3 : vector<1x128xf32> to vector<8x128xf32>
    %5 = arith.addf %2, %4 : vector<8x128xf32>
    %cst_5 = arith.constant 0.000000e+00 : f32
    %6 = vector.broadcast %cst_5 : f32 to vector<8x128xf32>
    %7 = arith.cmpf oge, %5, %6 : vector<8x128xf32>
    %cst_6 = arith.constant 0.00999999977 : f32
    %8 = vector.broadcast %cst_6 : f32 to vector<8x128xf32>
    %9 = arith.mulf %8, %5 : vector<8x128xf32>
    %10 = arith.select %7, %5, %9 : vector<8x128xi1>, vector<8x128xf32>
    %c0_7 = arith.constant 0 : index
    %c0_8 = arith.constant 0 : index
    %11 = vector.load %arg4[%c0_7, %c0_8] : memref<128x8xf32, #tpu.memory_space<vmem>>, vector<128x8xf32>
    %cst_9 = arith.constant dense<0.000000e+00> : vector<8x8xf32>
    %12 = tpu.matmul %10, %11, %cst_9 {dimension_numbers = #tpu.dot_dimension_numbers<[1], [0], [0], [1], [0, 0, 1, 1], [], []>} : vector<8x128xf32>, vector<128x8xf32>, vector<8x8xf32> -> vector<8x8xf32>
    %c0_10 = arith.constant 0 : index
    %c0_11 = arith.constant 0 : index
    %13 = vector.load %arg5[%c0_10, %c0_11] : memref<1x8xf32, #tpu.memory_space<vmem>>, vector<1x8xf32>
    %14 = vector.broadcast %13 : vector<1x8xf32> to vector<8x8xf32>
    %15 = arith.addf %12, %14 : vector<8x8xf32>
    %16 = vector.extract_strided_slice %15 {offsets = [0, 0], sizes = [8, 3], strides = [1, 1]} : vector<8x8xf32> to vector<8x3xf32>
    %cst_12 = arith.constant dense<0xFF800000> : vector<8xf32>
    %17 = vector.multi_reduction <maximumf>, %16, %cst_12 [1] : vector<8x3xf32> to vector<8xf32>
    %18 = vector.shape_cast %17 : vector<8xf32> to vector<8x1xf32>
    %19 = vector.broadcast %18 : vector<8x1xf32> to vector<8x3xf32>
    %20 = arith.subf %16, %19 : vector<8x3xf32>
    %21 = math.exp %20 : vector<8x3xf32>
    %cst_13 = arith.constant dense<0.000000e+00> : vector<8xf32>
    %22 = vector.multi_reduction <add>, %21, %cst_13 [1] : vector<8x3xf32> to vector<8xf32>
    %23 = vector.shape_cast %22 : vector<8xf32> to vector<8x1xf32>
    %24 = vector.broadcast %23 : vector<8x1xf32> to vector<8x3xf32>
    %25 = arith.divf %21, %24 : vector<8x3xf32>
    %c0_14 = arith.constant 0 : index
    %c0_15 = arith.constant 0 : index
    %26 = vector.load %arg6[%c0_14, %c0_15] : memref<8x3xf32, #tpu.memory_space<vmem>>, vector<8x3xf32>
    tpu.vector_store %arg6[%c0_14, %c0_15], %25 {strides = array<i32>} : memref<8x3xf32, #tpu.memory_space<vmem>>, vector<8x3xf32>,
    return
  }
  func.func @transform_0(%arg0: i32) -> (i32, i32) {
    %c0_i32 = arith.constant 0 : i32
    %c0_i32_0 = arith.constant 0 : i32
    return %arg0, %c0_i32 : i32, i32
  }
  func.func @transform_1(%arg0: i32) -> (i32, i32) {
    %c0_i32 = arith.constant 0 : i32
    %c0_i32_0 = arith.constant 0 : i32
    %c0_i32_1 = arith.constant 0 : i32
    return %c0_i32, %c0_i32_0 : i32, i32
  }
  func.func @transform_2(%arg0: i32) -> (i32, i32) {
    %c0_i32 = arith.constant 0 : i32
    %c0_i32_0 = arith.constant 0 : i32
    %c0_i32_1 = arith.constant 0 : i32
    return %c0_i32, %c0_i32_0 : i32, i32
  }
  func.func @transform_3(%arg0: i32) -> (i32, i32) {
    %c0_i32 = arith.constant 0 : i32
    %c0_i32_0 = arith.constant 0 : i32
    %c0_i32_1 = arith.constant 0 : i32
    return %c0_i32, %c0_i32_0 : i32, i32
  }
  func.func @transform_4(%arg0: i32) -> (i32, i32) {
    %c0_i32 = arith.constant 0 : i32
    %c0_i32_0 = arith.constant 0 : i32
    %c0_i32_1 = arith.constant 0 : i32
    return %c0_i32, %c0_i32_0 : i32, i32
  }
  func.func @transform_5(%arg0: i32) -> (i32, i32) {
    %c0_i32 = arith.constant 0 : i32
    %c0_i32_0 = arith.constant 0 : i32
    return %arg0, %c0_i32 : i32, i32
  }
}

</mosaic_0001>

<bundles_post_ra>
// kernel: tpu_custom_call.1
= control target key start
LH: loop header
LB: loop body
LE: loop exit
PB: predicated region body
PF: predicated region fallthrough
CT: control target
= control target key end

     0   :  { %10 = vsyncpa [#allocation3], 0  ;;  %v367_v2 = vmov 0.0|0.0   ;;  %vm368_vm0 = vmmov 0   ;;  %v369_v6 = vmov 0.0   ;;  %vm33_vm1 = vcmask 261120   ;;  %s487_s0 = inlined_call_operand.vmem [shape: f32[2,32], index: 0, kind: input, shape index: {}]   ;;  %s488_s1 = inlined_call_operand.vmem [shape: f32[32,128], index: 1, kind: input, shape index: {}]   ;;  %s489_s2 = inlined_call_operand.vmem [shape: f32[1,128], index: 2, kind: input, shape index: {}]   ;;  %s490_s3 = inlined_call_operand.vmem [shape: f32[128,8], index: 3, kind: input, shape index: {}]   ;;  %s491_s4 = inlined_call_operand.vmem [shape: f32[1,8], index: 4, kind: input, shape index: {}]   ;;  %s492_s5 = inlined_call_operand.hbm [shape: f32[2,3], index: 5, kind: output, shape index: {}]  }
   0x1   :  { %v22_v0 = vld [vmem:[%s488_s1] sm:$0xff]  ;;  %v23_v1 = vld [vmem:[%s488_s1 + $0x8] sm:$0xff]  ;;  %303 = vmatprep.subr.bf16.mxu0 %v367_v2  ;;  %v24_v4 = vld [vmem:[%s488_s1 + $0x10] sm:$0xff]  ;;  %309 = vmatprep.subr.bf16.mxu1 %v367_v2  ;;  %vm203_vm3 = vcmask 23552  }
   0x2   :  { %v304_v3 = vpack.c.bf16 %v23_v1, %v22_v0  ;;  %v25_v5 = vld [vmem:[%s488_s1 + $0x18] sm:$0xff]  ;;  %265 = vmatprep.mubr.msk.f32.mxu0 %vm368_vm0, %v369_v6  ;;  %v110_v7 = vld [vmem:[%s490_s3] sm:$0xff]  ;;  %v111_v8 = vld [vmem:[%s490_s3 + $0x8] sm:$0xff]  ;;  %300 = vmatprep.mubr.msk.f32.mxu1 %vm368_vm0, %v369_v6 }
   0x3   :  { %v112_v9 = vld [vmem:[%s490_s3 + $0x10] sm:$0xff]  ;;  %v307_v10 = vpack.c.bf16 %v25_v5, %v24_v4  ;;  %v310_v11 = vpack.c.bf16 %v111_v8, %v110_v7  ;;  %v113_v12 = vld [vmem:[%s490_s3 + $0x18] sm:$0xff]  ;;  %v114_v14 = vld [vmem:[%s490_s3 + $0x20] sm:$0xff] }
   0x4   :  { %305 = vmatpush3.bf16.msra.mxu0 %v304_v3  ;;  %v313_v13 = vpack.c.bf16 %v113_v12, %v112_v9  ;;  %v115_v15 = vld [vmem:[%s490_s3 + $0x28] sm:$0xff]  ;;  %v21_v16 = vld [vmem:[%s487_s0] sm:$0xff]  ;;  %v116_v18 = vld [vmem:[%s490_s3 + $0x30] sm:$0xff] }
   0x5   :  { %306 = vmatprep.subr.bf16.mxu0 %v367_v2  ;;  %311 = vmatpush3.bf16.msra.mxu1 %v310_v11  ;;  %v316_v17 = vpack.c.bf16 %v115_v15, %v114_v14  ;;  %v117_v19 = vld [vmem:[%s490_s3 + $0x38] sm:$0xff]  ;;  %v118_v21 = vld [vmem:[%s490_s3 + $0x40] sm:$0xff]  ;;  %v119_v22 = vld [vmem:[%s490_s3 + $0x48] sm:$0xff] }
   0x6   :  { %312 = vmatprep.subr.bf16.mxu1 %v367_v2  ;;  %v319_v20 = vpack.c.bf16 %v117_v19, %v116_v18  ;;  %v322_v23 = vpack.c.bf16 %v119_v22, %v118_v21  ;;  %v120_v24 = vld [vmem:[%s490_s3 + $0x50] sm:$0xff]  ;;  %v121_v25 = vld [vmem:[%s490_s3 + $0x58] sm:$0xff]  ;;  %v122_v27 = vld [vmem:[%s490_s3 + $0x60] sm:$0xff] }
   0x7   :  { %v325_v26 = vpack.c.bf16 %v121_v25, %v120_v24  ;;  %v123_v28 = vld [vmem:[%s490_s3 + $0x68] sm:$0xff]  ;;  %v124_v30 = vld [vmem:[%s490_s3 + $0x70] sm:$0xff]  ;;  %v125_v31 = vld [vmem:[%s490_s3 + $0x78] sm:$0xff] }
   0x8   :  { %308 = vmatpush3.bf16.msra.mxu0 %v307_v10  ;;  %v328_v29 = vpack.c.bf16 %v123_v28, %v122_v27  ;;  %v331_v32 = vpack.c.bf16 %v125_v31, %v124_v30  ;;  %v232_v33 = vld [vmem:[%s489_s2] ss:$0 sm:$0xff] }
   0x9   :  { %314 = vmatpush3.bf16.msra.mxu1 %v313_v13  ;;  %v234_v39 = vld [vmem:[%s491_s4] ss:$0 sm:$0xff] }
   0xa   :  { %315 = vmatprep.subr.bf16.mxu1 %v367_v2 }
   0xb   :  { %266 = vmatmul.mubr.msk.f32.vlgmr.msra.gmra.mrb[0].mxu0 %vm33_vm1, %v21_v16 }
   0xd   :  { %317 = vmatpush3.bf16.msra.mxu1 %v316_v17 }
   0xe   :  { %318 = vmatprep.subr.bf16.mxu1 %v367_v2 }
  0x11   :  { %320 = vmatpush3.bf16.msra.mxu1 %v319_v20 }
  0x12   :  { %321 = vmatprep.subr.bf16.mxu1 %v367_v2 }
  0x15   :  { %323 = vmatpush3.bf16.msra.mxu1 %v322_v23 }
  0x16   :  { %324 = vmatprep.subr.bf16.mxu1 %v367_v2 }
  0x19   :  { %326 = vmatpush3.bf16.msra.mxu1 %v325_v26 }
  0x1a   :  { %327 = vmatprep.subr.bf16.mxu1 %v367_v2 }
  0x1d   :  { %329 = vmatpush3.bf16.msra.mxu1 %v328_v29 }
  0x1e   :  { %330 = vmatprep.subr.bf16.mxu1 %v367_v2 }
  0x21   :  { %332 = vmatpush3.bf16.msra.mxu1 %v331_v32 }
  0xde   :  { %v103_v34 = vpop.f32.mrb[0].mxu0 }
  0xdf   :  { %v104_v35 = vadd.f32 %v232_v33, %v103_v34  ;;  %v267_v36 = vpop.f32.mrb[1].mxu0 }
  0xe1   :  { %v108_v37 = vmul.f32 0.01, %v104_v35  ;;  %vm107_vm2 = vcmp.ge.f32.partialorder %v104_v35, 0.0 }
  0xe3   :  { %v109_v38 = vsel %vm107_vm2, %v104_v35, %v108_v37 }
  0xe4   :  { %301 = vmatmul.mubr.f32.vlgmr.msra.gmra.mrb[0].mxu1 %v109_v38 }
 0x1b7   :  { %v199_v40 = vpop.f32.mrb[0].mxu1 }
 0x1b8   :  { %v200_v41 = vadd.f32 %v234_v39, %v199_v40  ;;  %v302_v42 = vpop.f32.mrb[1].mxu1 }
 0x1ba   :  { %v204_v43 = vsel %vm203_vm3, %v200_v41, -inf }
 0x1bb   :  { %205 = vmax.xlane.f32.xlu0 %v204_v43 }
 0x248   :  { %v206_v44 = vpop.xlane.xlu0 %205 }
 0x249   :  { %v207_v45 = vsub.f32 %v200_v41, %v206_v44 }
 0x24b   :  { %v208_v46 = vmul.f32 1.442695, %v207_v45 }
 0x24d   :  { %339 = vpow2.f32 %v208_v46 }
 0x257   :  { %v340_v47 = vpop.eup %339 }
 0x258   :  { %v210_v48 = vsel %vm203_vm3, %v340_v47, 0.0 }
 0x259   :  { %211 = vadd.xlane.f32.xlu0 %v210_v48 }
 0x2e6   :  { %v212_v49 = vpop.xlane.xlu0 %211 }
 0x2e7   :  { %341 = vrcp.f32 %v212_v49 }
 0x2f1   :  { %v342_v50 = vpop.eup %341 }
 0x2f2   :  { %v214_v51 = vmul.f32 %v342_v50, %v340_v47 }
 0x2f4   :  { %215 = vst.msk [vmem:[#allocation2] sm:$0xff] %vm203_vm3, %v214_v51 }
 0x2f5   :  { %220 = vsyncadd [#allocation3], 96  ;;  %s370_s2 = smov [#allocation2]  }
 0x2f6   :  { %s221_s3 = sshll.u32 %s370_s2, 4  ;;  %s222_s3 = int_to_ptr.vmem [resolvable:$true] %s221_s3 }
 0x2f7   :  { %s343_s4 = scalar_lea.vmem %s222_s3, 32  ;;  %s347_s11 = scalar_lea.vmem %s222_s3, 128 }
 0x2f8   :  { %p344_p0 = scmp.ne.s32.totalorder %s222_s3, %s343_s4  ;;  %p348_p1 = scmp.lt.s32.totalorder %s222_s3, %s222_s3 }
 0x2f9   :  { %p349_p2 = scmp.lt.s32.totalorder %s347_s11, %s343_s4 }
 0x2fb   :  { %p350_p3 = por %p349_p2, %p348_p1 }
 0x2fd   :  { %p351_p4 = pnand %p350_p3, %p344_p0 }
 0x2ff   :  { %354 = shalt.err (!%p351_p4)
}
 0x300   :  { %s355_s14 = scalar_lea.hbm %s492_s5, 32 }
 0x301   :  { %p356_p5 = scmp.ne.s32.totalorder %s492_s5, %s355_s14  ;;  %p359_p6 = scmp.lt.u32.totalorder %s355_s14, %s492_s5 }
 0x303   :  { %p361_p7 = pnand %p359_p6, %p356_p5 }
 0x305   :  { %364 = shalt.err (!%p361_p7)
}
 0x306   :  { %s371_s19 = smov 32   ;;  %s372_s0 = smov 2  }
 0x307   :  { %227 = dma.vmem_to_hbm [thread:$0]  %s222_s3, 32, %s492_s5, [#allocation3], %s371_s19, %s371_s19, %s372_s0  }
 0x308   :  { %365 = dma.done.wait [#allocation3], 128  }
 0x309   :  { %366 = vsyncadd [#allocation3], 4294967168 }
 0x30a   :  { %231 = vsyncpa [#allocation3], 1 }

</bundles_post_ra>
